<compile_context>
chip_gen: v5e
topology: v5e:2x2
jax: 0.10.0
libtpu: 0.0.40
codegen_flags: <defaults>
</compile_context>

<pallas_src>
import functools
import re

import jax
import jax.numpy as jnp
from jax.experimental import pallas as pl
from jax.experimental.pallas import tpu as pltpu

_LANE = 128      # lane width: last dim of every block is padded to this
_SUBLANE = 8     # f32 sublane packing
_MAX_TM = 512    # max batch rows per grid step (256 on v7x)


def _round_up(x, m):
    return ((x + m - 1) // m) * m


def _cdiv(a, b):
    return (a + b - 1) // b


def _tpu_generation():
    try:
        kind = jax.devices()[0].device_kind.lower()
    except Exception:
        return None
    m = re.search(r"v(\d+)", kind)
    return int(m.group(1)) if m else None


def _default_compute_dtype():
    # bf16 matmul inputs (with f32 accumulation) hit the native MXU rate on
    # v5e/v6e/v7x; f32 x f32 is emulated with multiple passes.
    gen = _tpu_generation()
    if gen is not None and gen >= 5:
        return jnp.bfloat16
    return jnp.float32


def _vmem_cap_bytes():
    # v7x has 64 MiB VMEM per TensorCore; v5e/v6e have 128 MiB.
    gen = _tpu_generation()
    if gen is not None and gen >= 7:
        return 56 << 20
    return 100 << 20


def _choose_tm(batch, max_tm):
    """Batch tile: minimal padding, >=2 grid steps when B > 8, sublane-aligned."""
    if batch <= _SUBLANE:
        return _SUBLANE
    n_tiles = max(2, _cdiv(batch, max_tm))
    tm = _round_up(_cdiv(batch, n_tiles), _SUBLANE)
    return min(tm, max_tm)


def _pick_tile(dim, cap=512):
    """Largest multiple of 128 <= cap that divides `dim` (dim is 128-aligned)."""
    best = _LANE
    t = _LANE
    while t <= min(dim, cap):
        if dim % t == 0:
            best = t
        t += _LANE
    return best


def _const_spec(shape):
    # Constant-index blocks (weights / biases): fetched once, VMEM-resident.
    # Buffered(1) disables the default double-buffering -> half the VMEM.
    try:
        return pl.BlockSpec(shape, lambda i: (0, 0), pipeline_mode=pl.Buffered(1))
    except (TypeError, AttributeError):
        return pl.BlockSpec(shape, lambda i: (0, 0))


# ----------------------------------------------------------------------------
# Fused kernel: the whole MLP for one batch tile.
#   refs = (x_ref, w0_ref, b0_ref, w1_ref, b1_ref, ..., o_ref)
# ----------------------------------------------------------------------------
def _fused_mlp_kernel(*refs, activations, compute_dtype):
    n_layers = len(activations)
    x_ref = refs[0]
    o_ref = refs[1 + 2 * n_layers]

    h = x_ref[...]                                   # (TM, D0_pad) in compute/in dtype
    for l in range(n_layers):
        w = refs[1 + 2 * l][...]                     # (Din_pad, Dout_pad) compute_dtype
        b = refs[2 + 2 * l][...]                     # (1, Dout_pad) f32
        lhs = h if h.dtype == compute_dtype else h.astype(compute_dtype)
        y = jnp.dot(lhs, w, preferred_element_type=jnp.float32)   # MXU, f32 acc
        y = y + b                                    # f32 epilogue (VPU)
        act = activations[l]
        if act == "relu":
            y = jnp.maximum(y, 0.0)
        elif act == "tanh":
            y = jnp.tanh(y)                          # EUP slot, f32
        elif act != "identity":
            raise ValueError(f"unsupported activation: {act}")
        h = y
    o_ref[...] = h.astype(o_ref.dtype)


# ----------------------------------------------------------------------------
# Fallback: one layer as a K/N-tiled matmul with an f32 accumulator scratch
# and a fused bias+activation epilogue on the last K step (P3 pattern).
# Used when resident weights would overflow the VMEM budget.
# ----------------------------------------------------------------------------
def _layer_kernel(x_ref, w_ref, b_ref, o_ref, acc_ref, *, activation):
    k = pl.program_id(2)

    @pl.when(k == 0)
    def _():
        acc_ref[...] = jnp.zeros_like(acc_ref)

    acc_ref[...] += jnp.dot(x_ref[...], w_ref[...],
                            preferred_element_type=jnp.float32)

    @pl.when(k == pl.num_programs(2) - 1)
    def _():
        y = acc_ref[...] + b_ref[...]
        if activation == "relu":
            y = jnp.maximum(y, 0.0)
        elif activation == "tanh":
            y = jnp.tanh(y)
        elif activation != "identity":
            raise ValueError(f"unsupported activation: {activation}")
        o_ref[...] = y.astype(o_ref.dtype)


def _tiled_layer(h, w_pad, b_pad, activation, tm, out_dtype, vmem_cap):
    M, K = h.shape
    K2, N = w_pad.shape
    assert K == K2
    tn = _pick_tile(N)
    tk = _pick_tile(K)

    in_item = jnp.dtype(h.dtype).itemsize
    w_item = jnp.dtype(w_pad.dtype).itemsize
    out_item = jnp.dtype(out_dtype).itemsize
    bytes_needed = (2 * tm * tk * in_item + 2 * tk * tn * w_item
                    + 2 * _SUBLANE * tn * 4 + 2 * tm * tn * out_item
                    + tm * tn * 4)
    vmem_limit = int(min(max(bytes_needed + (4 << 20), 16 << 20), vmem_cap))

    kernel = functools.partial(_layer_kernel, activation=activation)
    return pl.pallas_call(
        kernel,
        out_shape=jax.ShapeDtypeStruct((M, N), out_dtype),
        grid=(M // tm, N // tn, K // tk),
        in_specs=[pl.BlockSpec((tm, tk), lambda i, j, k: (i, k)),
                  pl.BlockSpec((tk, tn), lambda i, j, k: (k, j)),
                  pl.BlockSpec((1, tn), lambda i, j, k: (0, j))],
        out_specs=pl.BlockSpec((tm, tn), lambda i, j, k: (i, j)),
        scratch_shapes=[pltpu.VMEM((tm, tn), jnp.float32)],
        compiler_params=pltpu.CompilerParams(
            dimension_semantics=("parallel", "parallel", "arbitrary"),
            vmem_limit_bytes=vmem_limit),
    )(h, w_pad, b_pad)


# ----------------------------------------------------------------------------
# Forward wrapper
# ----------------------------------------------------------------------------
def mlp_forward(x, params_padded, activations, out_dim, force_tiled=False):
    """Run the MLP on TPU.

    x             : (B, D_in) f32
    params_padded : list of (w_pad (Din_pad, Dout_pad) compute_dtype,
                             b_pad (1, Dout_pad) f32), all lane-padded to 128.
    """
    B, D_in = x.shape
    compute_dtype = jnp.dtype(params_padded[0][0].dtype)
    d0_pad = params_padded[0][0].shape[0]
    d_last_pad = params_padded[-1][0].shape[1]

    gen = _tpu_generation()
    max_tm = 256 if (gen is not None and gen >= 7) else _MAX_TM
    TM = _choose_tm(B, max_tm)
    B_pad = _round_up(B, TM)

    # Input tile lives in compute_dtype (bf16 halves input DMA + skips the
    # layer-0 cast).  Skip the padded copy entirely when already aligned.
    in_dtype = compute_dtype
    if B_pad == B and d0_pad == D_in and x.dtype == in_dtype:
        x_in = x
    else:
        x_in = jnp.zeros((B_pad, d0_pad), in_dtype).at[:B, :D_in].set(
            x.astype(in_dtype))

    # VMEM budget: double-buffered activation tiles + single-buffered resident
    # weights/biases + live f32 intermediates, with headroom.
    in_item = jnp.dtype(in_dtype).itemsize
    bytes_needed = 2 * TM * d0_pad * in_item + 2 * TM * d_last_pad * 4
    for w_pad, b_pad in params_padded:
        bytes_needed += w_pad.size * w_pad.dtype.itemsize      # Buffered(1)
        bytes_needed += _SUBLANE * b_pad.shape[1] * 4
        bytes_needed += TM * w_pad.shape[1] * 4                 # intermediate act
    cap = _vmem_cap_bytes()
    headroom = 4 << 20
    use_fused = (not force_tiled) and (bytes_needed + headroom <= cap)

    if use_fused:
        vmem_limit = int(min(max(bytes_needed + headroom, 16 << 20), cap))
        in_specs = [pl.BlockSpec((TM, d0_pad), lambda i: (i, 0))]
        flat_inputs = [x_in]
        for w_pad, b_pad in params_padded:
            di, do = w_pad.shape
            in_specs.append(_const_spec((di, do)))
            in_specs.append(_const_spec((1, do)))
            flat_inputs += [w_pad, b_pad]
        out_specs = pl.BlockSpec((TM, d_last_pad), lambda i: (i, 0))

        kernel = functools.partial(_fused_mlp_kernel,
                                   activations=tuple(activations),
                                   compute_dtype=compute_dtype)
        out_pad = pl.pallas_call(
            kernel,
            out_shape=jax.ShapeDtypeStruct((B_pad, d_last_pad), jnp.float32),
            grid=(B_pad // TM,),
            in_specs=in_specs,
            out_specs=out_specs,
            compiler_params=pltpu.CompilerParams(
                dimension_semantics=("parallel",),   # megacore batch sharding
                vmem_limit_bytes=vmem_limit),
        )(*flat_inputs)
        return out_pad[:B, :out_dim]

    # Per-layer K/N-tiled fallback (weights too wide for VMEM residency).
    h = x_in
    n_layers = len(params_padded)
    for l, (w_pad, b_pad) in enumerate(params_padded):
        last = (l == n_layers - 1)
        out_dtype = jnp.float32 if last else compute_dtype
        h = _tiled_layer(h, w_pad, b_pad, activations[l], TM, out_dtype, cap)
    return h[:B, :out_dim]


# ----------------------------------------------------------------------------
# Parameter init: orthogonal weights (gain=1.0), zero bias — matches
# init_weights(module, gain=1.0) in the reference module.
# ----------------------------------------------------------------------------
def orthogonal_init(key, out_features, in_features, gain=1.0, dtype=jnp.float32):
    rows, cols = out_features, in_features
    flat = jax.random.normal(key, (max(rows, cols), min(rows, cols)),
                             dtype=jnp.float32)
    q, r = jnp.linalg.qr(flat)
    q = q * jnp.sign(jnp.diag(r))
    if rows < cols:
        q = q.T
    w = gain * q[:rows, :cols]
    return w.astype(dtype)


class MLP:
    """JAX/Pallas equivalent of the PyTorch MLP module (fused forward pass)."""

    def __init__(self, prefix, obs_dim, hidden_sizes, hidden_acts, key,
                 compute_dtype=None):
        if not isinstance(hidden_sizes, list):
            hidden_sizes = [hidden_sizes]
        if not isinstance(hidden_acts, list):
            hidden_acts = [hidden_acts] * len(hidden_sizes)
        assert len(hidden_acts) == len(hidden_sizes)
        self.prefix = prefix
        self.obs_dim = obs_dim
        self.hidden_sizes = list(hidden_sizes)
        self.acts = list(hidden_acts)
        self.compute_dtype = (_default_compute_dtype() if compute_dtype is None
                              else compute_dtype)

        sizes = [obs_dim] + list(hidden_sizes)
        self.params = []          # unpadded (w_t (in, out) f32, b (1, out) f32)
        self.params_padded = []   # lane-padded, weight cast to compute_dtype
        for i in range(len(sizes) - 1):
            key, sub = jax.random.split(key)
            w = orthogonal_init(sub, sizes[i + 1], sizes[i], gain=1.0)  # (out, in)
            w_t = w.T                                                   # (in, out)
            b = jnp.zeros((1, sizes[i + 1]), jnp.float32)
            self.params.append((w_t, b))

            di_pad = _round_up(sizes[i], _LANE)
            do_pad = _round_up(sizes[i + 1], _LANE)
            w_pad = (jnp.zeros((di_pad, do_pad), jnp.float32)
                     .at[:sizes[i], :sizes[i + 1]].set(w_t)
                     .astype(self.compute_dtype))
            b_pad = (jnp.zeros((1, do_pad), jnp.float32)
                     .at[:, :sizes[i + 1]].set(b))
            self.params_padded.append((w_pad, b_pad))

    def forward(self, obs, force_tiled=False):
        return mlp_forward(obs, self.params_padded, self.acts,
                           out_dim=self.hidden_sizes[-1],
                           force_tiled=force_tiled)

    __call__ = forward


if __name__ == "__main__":
    key = jax.random.PRNGKey(0)
    key_params, key_obs = jax.random.split(key)

    batch = 8
    obs_dim = 16
    hidden_sizes = [32, 32]
    hidden_acts = ["relu", "relu"]        # nn.ReLU in the PyTorch module

    obs = jax.random.normal(key_obs, (batch, obs_dim), dtype=jnp.float32)

    # Exact f32 path (bit-faithful to the PyTorch semantics).
    mlp_f32 = MLP("actor", obs_dim, hidden_sizes, hidden_acts, key_params,
                  compute_dtype=jnp.float32)
    out = jax.block_until_ready(mlp_f32(obs))

    # Pure-JAX reference on the unpadded params.
    ref = obs
    for (w_t, b), act in zip(mlp_f32.params, mlp_f32.acts):
        ref = ref @ w_t + b
        if act == "relu":
            ref = jnp.maximum(ref, 0.0)
        elif act == "tanh":
            ref = jnp.tanh(ref)
    assert out.shape == (batch, hidden_sizes[-1])
    assert jnp.allclose(out, ref, atol=1e-5, rtol=1e-5)

    # Default compute dtype (bf16 MXU fast path on v5e/v6e/v7x), f32 accum.
    mlp_fast = MLP("actor", obs_dim, hidden_sizes, hidden_acts, key_params)
    out_fast = jax.block_until_ready(mlp_fast(obs))
    assert out_fast.shape == (batch, hidden_sizes[-1])
    assert jnp.allclose(out_fast, ref, atol=1e-1, rtol=1e-1)

    # Multi-step batch grid (grid >= 2, padded rows sliced off).
    obs_big = jax.random.normal(key_obs, (24, obs_dim), dtype=jnp.float32)
    out_big = jax.block_until_ready(mlp_f32(obs_big))
    ref_big = obs_big
    for (w_t, b), _ in zip(mlp_f32.params, mlp_f32.acts):
        ref_big = jnp.maximum(ref_big @ w_t + b, 0.0)
    assert out_big.shape == (24, hidden_sizes[-1])
    assert jnp.allclose(out_big, ref_big, atol=1e-5, rtol=1e-5)

    # Exercise the per-layer K/N-tiled fallback (VMEM-overflow path).
    out_tiled = jax.block_until_ready(mlp_f32(obs, force_tiled=True))
    assert jnp.allclose(out_tiled, ref, atol=1e-5, rtol=1e-5)

    print("KERNEL_OK")
</pallas_src>

<mosaic_0001>
module attributes {stable_mosaic.version = 11 : i64} {
  func.func @_fused_mlp_kernel(%arg0: i32, %arg1: memref<8x128xf32, #tpu.memory_space<vmem>>, %arg2: memref<128x128xf32, #tpu.memory_space<vmem>>, %arg3: memref<1x128xf32, #tpu.memory_space<vmem>>, %arg4: memref<128x128xf32, #tpu.memory_space<vmem>>, %arg5: memref<1x128xf32, #tpu.memory_space<vmem>>, %arg6: memref<8x128xf32, #tpu.memory_space<vmem>>) attributes {dimension_semantics = [#tpu.dimension_semantics<parallel>], iteration_bounds = array<i64: 1>, scalar_prefetch = 0 : i64, scratch_operands = 0 : i64, tpu.core_type = #tpu.core_type<tc>, window_params = [{transform_indices = @transform_0, window_bounds = array<i64: 8, 128>}, {pipeline_mode = #tpu.pipeline_mode<synchronous>, transform_indices = @transform_1, window_bounds = array<i64: 128, 128>}, {pipeline_mode = #tpu.pipeline_mode<synchronous>, transform_indices = @transform_2, window_bounds = array<i64: 1, 128>}, {pipeline_mode = #tpu.pipeline_mode<synchronous>, transform_indices = @transform_3, window_bounds = array<i64: 128, 128>}, {pipeline_mode = #tpu.pipeline_mode<synchronous>, transform_indices = @transform_4, window_bounds = array<i64: 1, 128>}, {transform_indices = @transform_5, window_bounds = array<i64: 8, 128>}]} {
    %c0 = arith.constant 0 : index
    %c0_0 = arith.constant 0 : index
    %0 = vector.load %arg1[%c0, %c0_0] : memref<8x128xf32, #tpu.memory_space<vmem>>, vector<8x128xf32>
    %c0_1 = arith.constant 0 : index
    %c0_2 = arith.constant 0 : index
    %1 = vector.load %arg2[%c0_1, %c0_2] : memref<128x128xf32, #tpu.memory_space<vmem>>, vector<128x128xf32>
    %c0_3 = arith.constant 0 : index
    %c0_4 = arith.constant 0 : index
    %2 = vector.load %arg3[%c0_3, %c0_4] : memref<1x128xf32, #tpu.memory_space<vmem>>, vector<1x128xf32>
    %cst = arith.constant dense<0.000000e+00> : vector<8x128xf32>
    %3 = tpu.matmul %0, %1, %cst {dimension_numbers = #tpu.dot_dimension_numbers<[1], [0], [0], [1], [0, 0, 1, 1], [], []>} : vector<8x128xf32>, vector<128x128xf32>, vector<8x128xf32> -> vector<8x128xf32>
    %4 = vector.broadcast %2 : vector<1x128xf32> to vector<8x128xf32>
    %5 = arith.addf %3, %4 : vector<8x128xf32>
    %cst_5 = arith.constant 0.000000e+00 : f32
    %6 = vector.broadcast %cst_5 : f32 to vector<8x128xf32>
    %7 = arith.maximumf %5, %6 : vector<8x128xf32>
    %c0_6 = arith.constant 0 : index
    %c0_7 = arith.constant 0 : index
    %8 = vector.load %arg4[%c0_6, %c0_7] : memref<128x128xf32, #tpu.memory_space<vmem>>, vector<128x128xf32>
    %c0_8 = arith.constant 0 : index
    %c0_9 = arith.constant 0 : index
    %9 = vector.load %arg5[%c0_8, %c0_9] : memref<1x128xf32, #tpu.memory_space<vmem>>, vector<1x128xf32>
    %cst_10 = arith.constant dense<0.000000e+00> : vector<8x128xf32>
    %10 = tpu.matmul %7, %8, %cst_10 {dimension_numbers = #tpu.dot_dimension_numbers<[1], [0], [0], [1], [0, 0, 1, 1], [], []>} : vector<8x128xf32>, vector<128x128xf32>, vector<8x128xf32> -> vector<8x128xf32>
    %11 = vector.broadcast %9 : vector<1x128xf32> to vector<8x128xf32>
    %12 = arith.addf %10, %11 : vector<8x128xf32>
    %cst_11 = arith.constant 0.000000e+00 : f32
    %13 = vector.broadcast %cst_11 : f32 to vector<8x128xf32>
    %14 = arith.maximumf %12, %13 : vector<8x128xf32>
    %c0_12 = arith.constant 0 : index
    %c0_13 = arith.constant 0 : index
    %15 = vector.load %arg6[%c0_12, %c0_13] : memref<8x128xf32, #tpu.memory_space<vmem>>, vector<8x128xf32>
    tpu.vector_store %arg6[%c0_12, %c0_13], %14 {strides = array<i32>} : memref<8x128xf32, #tpu.memory_space<vmem>>, vector<8x128xf32>,
    return
  }
  func.func @transform_0(%arg0: i32) -> (i32, i32) {
    %c0_i32 = arith.constant 0 : i32
    %c0_i32_0 = arith.constant 0 : i32
    return %arg0, %c0_i32 : i32, i32
  }
  func.func @transform_1(%arg0: i32) -> (i32, i32) {
    %c0_i32 = arith.constant 0 : i32
    %c0_i32_0 = arith.constant 0 : i32
    %c0_i32_1 = arith.constant 0 : i32
    return %c0_i32, %c0_i32_0 : i32, i32
  }
  func.func @transform_2(%arg0: i32) -> (i32, i32) {
    %c0_i32 = arith.constant 0 : i32
    %c0_i32_0 = arith.constant 0 : i32
    %c0_i32_1 = arith.constant 0 : i32
    return %c0_i32, %c0_i32_0 : i32, i32
  }
  func.func @transform_3(%arg0: i32) -> (i32, i32) {
    %c0_i32 = arith.constant 0 : i32
    %c0_i32_0 = arith.constant 0 : i32
    %c0_i32_1 = arith.constant 0 : i32
    return %c0_i32, %c0_i32_0 : i32, i32
  }
  func.func @transform_4(%arg0: i32) -> (i32, i32) {
    %c0_i32 = arith.constant 0 : i32
    %c0_i32_0 = arith.constant 0 : i32
    %c0_i32_1 = arith.constant 0 : i32
    return %c0_i32, %c0_i32_0 : i32, i32
  }
  func.func @transform_5(%arg0: i32) -> (i32, i32) {
    %c0_i32 = arith.constant 0 : i32
    %c0_i32_0 = arith.constant 0 : i32
    return %arg0, %c0_i32 : i32, i32
  }
}

</mosaic_0001>

<bundles_post_ra>
// kernel: tpu_custom_call.1
= control target key start
LH: loop header
LB: loop body
LE: loop exit
PB: predicated region body
PF: predicated region fallthrough
CT: control target
= control target key end

     0   :  { %10 = vsyncpa [#allocation3], 0  ;;  %s332_s0 = inlined_call_operand.hbm [shape: f32[8,128], index: 0, kind: input, shape index: {}]   ;;  %s333_s1 = inlined_call_operand.hbm [shape: f32[128,128], index: 1, kind: input, shape index: {}]   ;;  %s334_s2 = inlined_call_operand.vmem [shape: f32[1,128], index: 2, kind: input, shape index: {}]   ;;  %s335_s3 = inlined_call_operand.hbm [shape: f32[128,128], index: 3, kind: input, shape index: {}]   ;;  %s336_s4 = inlined_call_operand.vmem [shape: f32[1,128], index: 4, kind: input, shape index: {}]   ;;  %s337_s5 = inlined_call_operand.hbm [shape: f32[8,128], index: 5, kind: output, shape index: {}]  }
   0x1   :  { %11 = vsyncpa [#allocation6], 0  ;;  %s28_s20 = sshll.u32 %s333_s1, 4  ;;  %s29_s20 = int_to_ptr.hbm [resolvable:$true] %s28_s20 }
   0x2   :  { %12 = vsyncpa [#allocation4], 0  ;;  %s278_s21 = smov [#allocation5]   ;;  %s18_s25 = sshll.u32 %s332_s0, 4  ;;  %s19_s25 = int_to_ptr.hbm [resolvable:$true] %s18_s25 }
   0x3   :  { %s30_s22 = sshll.u32 %s278_s21, 4  ;;  %s279_s26 = smov 128   ;;  %s31_s22 = int_to_ptr.vmem [resolvable:$true] %s30_s22 }
   0x4   :  { %s280_s27 = smov 8   ;;  %s281_s28 = smov [#allocation2]  }
   0x5   :  { %36 = dma.hbm_to_vmem [thread:$0]  %s29_s20, 2048, %s31_s22, [#allocation6], %s279_s26, %s279_s26, %s280_s27  }
   0x6   :  { %s20_s29 = sshll.u32 %s281_s28, 4  ;;  %s43_s7 = sshll.u32 %s335_s3, 4  ;;  %s21_s29 = int_to_ptr.vmem [resolvable:$true] %s20_s29  ;;  %s44_s7 = int_to_ptr.hbm [resolvable:$true] %s43_s7 }
   0x7   :  { %23 = dma.hbm_to_vmem [thread:$0]  %s19_s25, 128, %s21_s29, [#allocation3]  }
   0x8   :  { %s282_s1 = smov [#allocation7]  }
   0x9   :  { %s45_s8 = sshll.u32 %s282_s1, 4  ;;  %s46_s8 = int_to_ptr.vmem [resolvable:$true] %s45_s8 }
   0xa   :  { %51 = dma.hbm_to_vmem [thread:$0]  %s44_s7, 2048, %s46_s8, [#allocation6], %s279_s26, %s279_s26, %s280_s27  }
   0xb   :  { %272 = dma.done.wait [#allocation3], 128  }
   0xc   :  { %273 = vsyncadd [#allocation3], 4294967168 }
   0xd   :  { %274 = dma.done.wait [#allocation6], 4096  }
   0xe   :  { %275 = vsyncadd [#allocation6], 4294963200  ;;  %v82_v0 = vld [vmem:[#allocation5 + $0x78] sm:$0xff]  ;;  %v81_v1 = vld [vmem:[#allocation5 + $0x70] sm:$0xff]  ;;  %s283_s11 = smov [#allocation8]   ;;  %s157_s15 = sshll.u32 %s337_s5, 4  ;;  %s158_s15 = int_to_ptr.hbm [resolvable:$true] %s157_s15 }
   0xf   :  { %87 = vmatpush.msra.mxu0 %v82_v0  ;;  %v80_v2 = vld [vmem:[#allocation5 + $0x68] sm:$0xff]  ;;  %v79_v3 = vld [vmem:[#allocation5 + $0x60] sm:$0xff]  ;;  %v123_v4 = vld [vmem:[#allocation7 + $0x78] sm:$0xff]  ;;  %s155_s12 = sshll.u32 %s283_s11, 4  ;;  %s156_s12 = int_to_ptr.vmem [resolvable:$true] %s155_s12 }
  0x10   :  { %v78_v5 = vld [vmem:[#allocation5 + $0x58] sm:$0xff]  ;;  %128 = vmatpush.msra.mxu1 %v123_v4  ;;  %v122_v6 = vld [vmem:[#allocation7 + $0x70] sm:$0xff]  ;;  %v121_v7 = vld [vmem:[#allocation7 + $0x68] sm:$0xff] }
  0x11   :  { %88 = vmatpush.msra.mxu0 %v81_v1  ;;  %v77_v8 = vld [vmem:[#allocation5 + $0x50] sm:$0xff]  ;;  %v120_v9 = vld [vmem:[#allocation7 + $0x60] sm:$0xff]  ;;  %v76_v10 = vld [vmem:[#allocation5 + $0x48] sm:$0xff] }
  0x12   :  { %129 = vmatpush.msra.mxu1 %v122_v6  ;;  %v119_v11 = vld [vmem:[#allocation7 + $0x58] sm:$0xff]  ;;  %v75_v12 = vld [vmem:[#allocation5 + $0x40] sm:$0xff]  ;;  %v118_v13 = vld [vmem:[#allocation7 + $0x50] sm:$0xff] }
  0x13   :  { %89 = vmatpush.msra.mxu0 %v80_v2  ;;  %v74_v14 = vld [vmem:[#allocation5 + $0x38] sm:$0xff]  ;;  %v117_v15 = vld [vmem:[#allocation7 + $0x48] sm:$0xff]  ;;  %v73_v16 = vld [vmem:[#allocation5 + $0x30] sm:$0xff] }
  0x14   :  { %130 = vmatpush.msra.mxu1 %v121_v7  ;;  %v116_v17 = vld [vmem:[#allocation7 + $0x40] sm:$0xff]  ;;  %v72_v18 = vld [vmem:[#allocation5 + $0x28] sm:$0xff]  ;;  %v115_v19 = vld [vmem:[#allocation7 + $0x38] sm:$0xff] }
  0x15   :  { %90 = vmatpush.msra.mxu0 %v79_v3  ;;  %v71_v20 = vld [vmem:[#allocation5 + $0x20] sm:$0xff]  ;;  %v114_v21 = vld [vmem:[#allocation7 + $0x30] sm:$0xff]  ;;  %v70_v22 = vld [vmem:[#allocation5 + $0x18] sm:$0xff] }
  0x16   :  { %131 = vmatpush.msra.mxu1 %v120_v9  ;;  %v113_v23 = vld [vmem:[#allocation7 + $0x28] sm:$0xff]  ;;  %v69_v24 = vld [vmem:[#allocation5 + $0x10] sm:$0xff]  ;;  %v112_v25 = vld [vmem:[#allocation7 + $0x20] sm:$0xff] }
  0x17   :  { %91 = vmatpush.msra.mxu0 %v78_v5  ;;  %v68_v26 = vld [vmem:[#allocation5 + $0x8] sm:$0xff]  ;;  %v111_v27 = vld [vmem:[#allocation7 + $0x18] sm:$0xff]  ;;  %v67_v28 = vld [vmem:[#allocation5] sm:$0xff] }
  0x18   :  { %132 = vmatpush.msra.mxu1 %v119_v11  ;;  %v66_v29 = vld [vmem:[#allocation2] sm:$0xff]  ;;  %v110_v30 = vld [vmem:[#allocation7 + $0x10] sm:$0xff]  ;;  %v109_v31 = vld [vmem:[#allocation7 + $0x8] sm:$0xff] }
  0x19   :  { %92 = vmatpush.msra.mxu0 %v77_v8  ;;  %v108_v32 = vld [vmem:[#allocation7] sm:$0xff]  ;;  %v174_v33 = vld [vmem:[%s334_s2] ss:$0 sm:$0xff] }
  0x1a   :  { %133 = vmatpush.msra.mxu1 %v118_v13  ;;  %v175_v37 = vld [vmem:[%s336_s4] ss:$0 sm:$0xff] }
  0x1b   :  { %93 = vmatpush.msra.mxu0 %v76_v10 }
  0x1c   :  { %134 = vmatpush.msra.mxu1 %v117_v15 }
  0x1d   :  { %94 = vmatpush.msra.mxu0 %v75_v12 }
  0x1e   :  { %135 = vmatpush.msra.mxu1 %v116_v17 }
  0x1f   :  { %95 = vmatpush.msra.mxu0 %v74_v14 }
  0x20   :  { %136 = vmatpush.msra.mxu1 %v115_v19 }
  0x21   :  { %96 = vmatpush.msra.mxu0 %v73_v16 }
  0x22   :  { %137 = vmatpush.msra.mxu1 %v114_v21 }
  0x23   :  { %97 = vmatpush.msra.mxu0 %v72_v18 }
  0x24   :  { %138 = vmatpush.msra.mxu1 %v113_v23 }
  0x25   :  { %98 = vmatpush.msra.mxu0 %v71_v20 }
  0x26   :  { %139 = vmatpush.msra.mxu1 %v112_v25 }
  0x27   :  { %99 = vmatpush.msra.mxu0 %v70_v22 }
  0x28   :  { %140 = vmatpush.msra.mxu1 %v111_v27 }
  0x29   :  { %100 = vmatpush.msra.mxu0 %v69_v24 }
  0x2a   :  { %141 = vmatpush.msra.mxu1 %v110_v30 }
  0x2b   :  { %101 = vmatpush.msra.mxu0 %v68_v26 }
  0x2c   :  { %142 = vmatpush.msra.mxu1 %v109_v31 }
  0x2d   :  { %102 = vmatpush.msra.mxu0 %v67_v28 }
  0x2e   :  { %103 = vmatmul.f32.vlgmr.msra.gmra.mxu0 %v66_v29  ;;  %143 = vmatpush.msra.mxu1 %v108_v32 }
  0xab   :  { %v104_v34 = vpop.f32.mrf.mxu0 }
  0xac   :  { %v105_v35 = vadd.f32 %v174_v33, %v104_v34 }
  0xae   :  { %v107_v36 = vmax.f32 %v105_v35, 0.0 }
  0xb0   :  { %144 = vmatmul.f32.vlgmr.msra.gmra.mxu1 %v107_v36 }
 0x12d   :  { %v145_v38 = vpop.f32.mrf.mxu1 }
 0x12e   :  { %v146_v39 = vadd.f32 %v175_v37, %v145_v38 }
 0x130   :  { %v148_v40 = vmax.f32 %v146_v39, 0.0 }
 0x132   :  { %149 = vst [vmem:[#allocation8] sm:$0xff] %v148_v40 }
 0x133   :  { %160 = dma.vmem_to_hbm [thread:$0]  %s156_s12, 128, %s158_s15, [#allocation4]  }
 0x134   :  { %276 = dma.done.wait [#allocation4], 128  }
 0x135   :  { %277 = vsyncadd [#allocation4], 4294967168 }
 0x136   :  { %165 = vsyncpa [#allocation3], 1 }
 0x137   :  { %166 = vsyncpa [#allocation6], 1 }
 0x138   :  { %167 = vsyncpa [#allocation4], 1 }

</bundles_post_ra>
